<compile_context>
chip_gen: v5e
topology: v5e:2x2
jax: 0.10.0
libtpu: 0.0.40
codegen_flags: <defaults>
</compile_context>

<pallas_src>
import functools

import jax
import jax.numpy as jnp
from jax import lax
from jax.experimental import pallas as pl
from jax.experimental.pallas import tpu as pltpu


# ----------------------------- Pallas kernel --------------------------------

def _softshrink(z, lambd=1.0):
    # 3 VALU ops (min+max+sub) instead of the 6-op nested-where form.
    return z - jnp.clip(z, -lambd, lambd)


def scn_core_kernel(feat_ref, ww_ref, saug_ref, dxw_ref, out_ref, zin_ref, *, k):
    # feat_ref : (my, tile)   bf16   channels on sublane, pixels on lane
    # ww_ref   : (n, my)      bf16   W_eff  = diag(1/theta) @ W
    # saug_ref : (n, 2n)      bf16   [ diag(1/theta) @ S @ diag(theta) | I_n ]
    # dxw_ref  : (mx, n)      bf16   Dx_eff = Dx @ diag(theta)
    # out_ref  : (mx, tile)   bf16
    # zin_ref  : (2n, tile)   bf16   scratch: [shrink(z) ; y] stacked for the MXU
    n = ww_ref.shape[0]
    x = feat_ref[...]
    w = ww_ref[...]
    s_aug = saug_ref[...]
    dx = dxw_ref[...]

    y = jnp.dot(w, x, preferred_element_type=jnp.float32)           # (n, tile) f32
    zin_ref[n:, :] = y.astype(zin_ref.dtype)                        # y half, once per block
    z = y
    for _ in range(k):                                               # small static unroll
        zin_ref[:n, :] = _softshrink(z).astype(zin_ref.dtype)
        # S_eff @ shrink(z) + y in a single MXU pass (contraction 2n <= 128).
        z = jnp.dot(s_aug, zin_ref[...], preferred_element_type=jnp.float32)
    z = _softshrink(z)
    out_ref[...] = jnp.dot(dx, z.astype(dx.dtype),
                           preferred_element_type=jnp.float32).astype(out_ref.dtype)


def scn_core(feat, w_eff, s_aug, dx_eff, *, k, tile_cap=1024):
    # feat: (b, my, wh) bf16; weights already theta-folded and cast to bf16.
    #
    # VMEM per lane of tile (double-buffered feat/out + live f32 y/z + bf16 scratch):
    #   ~2*(my*2) + 2*(mx*2) + ~3*(n*4) + (2n*2) bytes  ~= 0.6 KB/lane for the
    # default sizes, so a 1024-lane tile stays well under 1 MiB -> safe under the
    # 32 MiB scoped VMEM on every generation (incl. v7x's 64 MiB physical VMEM).
    b, my, wh = feat.shape
    n = w_eff.shape[0]
    mx = dx_eff.shape[0]

    wh128 = pl.cdiv(wh, 128) * 128
    tile = min(tile_cap, wh128)
    assert tile % 128 == 0
    wh_pad = pl.cdiv(wh, tile) * tile
    if wh_pad != wh:
        # Zero-pad the pixel axis; padded lanes compute zeros and are sliced off.
        feat = jnp.pad(feat, ((0, 0), (0, 0), (0, wh_pad - wh)))

    grid = (b, wh_pad // tile)      # >= b parallel blocks keeps both v7x TCs busy
    out = pl.pallas_call(
        functools.partial(scn_core_kernel, k=k),
        out_shape=jax.ShapeDtypeStruct((b, mx, wh_pad), jnp.bfloat16),
        grid_spec=pltpu.PrefetchScalarGridSpec(
            num_scalar_prefetch=0,
            grid=grid,
            in_specs=[
                # For exposed input DMA on v5e, consider pipeline_mode=pl.Buffered(3).
                pl.BlockSpec((None, my, tile), lambda i, j: (i, 0, j)),  # batch squeezed
                pl.BlockSpec((n, my), lambda i, j: (0, 0)),
                pl.BlockSpec((n, 2 * n), lambda i, j: (0, 0)),
                pl.BlockSpec((mx, n), lambda i, j: (0, 0)),
            ],
            out_specs=pl.BlockSpec((None, mx, tile), lambda i, j: (i, 0, j)),
            scratch_shapes=[pltpu.VMEM((2 * n, tile), jnp.bfloat16)],
        ),
        compiler_params=pltpu.CompilerParams(
            dimension_semantics=("parallel", "parallel"),
            vmem_limit_bytes=32 * 1024 * 1024),
    )(feat, w_eff, s_aug, dx_eff)
    if wh_pad != wh:
        out = out[:, :, :wh]
    return out


# ------------------------------ JAX glue -------------------------------------

def conv2d_nchw(x, w, b, pad):
    out = lax.conv_general_dilated(
        x, w, window_strides=(1, 1),
        padding=((pad, pad), (pad, pad)),
        dimension_numbers=('NCHW', 'OIHW', 'NCHW'))
    if b is not None:
        out = out + b.reshape(1, -1, 1, 1)
    return out


def fold_theta(W, S, Dx, theta):
    """Fold theta into the effective (PyTorch-layout) weight matrices.

    The PyTorch forward applies softshrink(lambd=1) in the /theta domain, so
      (W x)/th                == (diag(1/th) W) x
      (S (th*z))/th + y       == (diag(1/th) S diag(th)) z + y
      Dx (th*z)               == (Dx diag(th)) z
    exactly (theta must be nonzero).  S_aug = [S_eff | I] lets the kernel fuse
    the "+ y" into the same MXU pass.
    """
    th = theta.reshape(-1)                                   # (n,)
    n = th.shape[0]
    w_eff = W / th[:, None]                                  # (n, my)
    s_eff = S * (th[None, :] / th[:, None])                  # (n, n)
    dx_eff = Dx * th[None, :]                                # (mx, n)
    s_aug = jnp.concatenate([s_eff, jnp.eye(n, dtype=s_eff.dtype)], axis=1)  # (n, 2n)
    return (w_eff.astype(jnp.bfloat16),
            s_aug.astype(jnp.bfloat16),
            dx_eff.astype(jnp.bfloat16))


def init_params(cfg, key):
    my, sy, n, sg = cfg['my'], cfg['sy'], cfg['n'], cfg['sg']
    mx = cfg['sx'] * cfg['sx']
    C, L = 5.0, 5.0
    k0, k1, k2, k3, k4 = jax.random.split(key, 5)

    Dy = 0.1 * jax.random.normal(k0, (my, n), jnp.float32)          # init.normal_(Dy,0,0.1)
    H_w = jax.random.uniform(k1, (my, 1, sy, sy), jnp.float32, -0.1, 0.1)
    # NOTE: the PyTorch module overwrites a few H filters with fixed edge kernels;
    # that is an init-only detail and does not change the forward computation.
    H_b = 0.01 * jax.random.normal(k2, (my,), jnp.float32)
    # weight_norm at init reproduces the assigned weight, so use effective weights
    # directly, in PyTorch Linear layout (out_features, in_features):
    W = Dy.T * C                                                    # (n, my)
    S = jnp.eye(n, dtype=jnp.float32) - Dy.T @ Dy                   # (n, n)
    Dx = 0.1 * jax.random.normal(k3, (mx, n), jnp.float32) / (L * C)  # (mx, n)
    G_w = jnp.full((1, mx, sg, sg), 1.0 / (sg * sg), jnp.float32)
    G_b = 0.01 * jax.random.normal(k4, (1,), jnp.float32)
    T_w = jnp.full((1, 1, sy, sy), 1.0 / (sy * sy), jnp.float32)
    T_b = jnp.zeros((1,), jnp.float32)
    theta = jnp.ones((1, n), jnp.float32)
    return dict(H_w=H_w, H_b=H_b, W=W, S=S, Dx=Dx,
                G_w=G_w, G_b=G_b, T_w=T_w, T_b=T_b, theta=theta,
                mx=mx, sy=sy, sg=sg, k=cfg['k'])


def scn_theta_forward(y, p):
    pad_sy = p['sy'] // 2
    pad_sg = p['sg'] // 2
    means = conv2d_nchw(y, p['T_w'], p['T_b'], pad_sy)              # (b,1,W,H)
    y0 = y - means
    h = conv2d_nchw(y0, p['H_w'], p['H_b'], pad_sy)                 # (b,my,W,H)
    b, my, wdim, hdim = h.shape
    feat = h.reshape(b, my, wdim * hdim)                            # (b,my,wh) - no transpose
    w_eff, s_aug, dx_eff = fold_theta(p['W'], p['S'], p['Dx'], p['theta'])
    z = scn_core(feat.astype(jnp.bfloat16), w_eff, s_aug, dx_eff, k=p['k'])
    z = z.reshape(b, p['mx'], wdim, hdim).astype(jnp.float32)       # (b,mx,W,H) - no transpose
    z = conv2d_nchw(z, p['G_w'], p['G_b'], pad_sg)                  # (b,1,W,H)
    return z + means


def scn_core_ref(feat, W, S, Dx, theta, k):
    """Unfolded f32 reference in channels-first layout (matches PyTorch math)."""
    hp = lax.Precision.HIGHEST
    th = theta.reshape(1, -1, 1)                                    # (1, n, 1)
    y = jnp.einsum('nm,bmp->bnp', W, feat, precision=hp) / th
    z = y
    for _ in range(k):
        z = jnp.where(z > 1.0, z - 1.0, jnp.where(z < -1.0, z + 1.0, 0.0))
        z = jnp.einsum('ij,bjp->bip', S, th * z, precision=hp) / th + y
    z = jnp.where(z > 1.0, z - 1.0, jnp.where(z < -1.0, z + 1.0, 0.0))
    return jnp.einsum('xn,bnp->bxp', Dx, th * z, precision=hp)


# -------------------------------- main ---------------------------------------

if __name__ == "__main__":
    cfg = dict(my=8, sy=3, n=32, sx=4, sg=3, k=3)   # mx = sx*sx = 16
    key = jax.random.PRNGKey(0)
    kp, kx, kf, kt, kg = jax.random.split(key, 5)
    params = init_params(cfg, kp)

    y = jax.random.normal(kx, (2, 1, 16, 16), jnp.float32)          # NCHW input

    out = jax.block_until_ready(scn_theta_forward(y, params))
    assert out.shape == (2, 1, 16, 16), out.shape

    # Sanity check of the Pallas core (theta folding + [S|I] fusion + bf16 matmuls
    # + bf16 output) against a plain-JAX unfolded f32 reference, using a
    # non-unit theta so the folding algebra is actually exercised.
    n, my, mx = cfg['n'], cfg['my'], cfg['sx'] * cfg['sx']
    feat_t = 2.0 * jax.random.normal(kf, (2, my, 256), jnp.float32)
    theta_t = jax.random.uniform(kt, (1, n), jnp.float32, 0.75, 1.25)
    w_eff, s_aug, dx_eff = fold_theta(params['W'], params['S'], params['Dx'], theta_t)
    core = scn_core(feat_t.astype(jnp.bfloat16), w_eff, s_aug, dx_eff, k=cfg['k'])
    ref = scn_core_ref(feat_t, params['W'], params['S'], params['Dx'],
                       theta_t, cfg['k'])
    rel_err = float(jnp.max(jnp.abs(core.astype(jnp.float32) - ref)) /
                    jnp.max(jnp.abs(ref)))
    assert rel_err < 5e-2, rel_err   # bf16 operands/output, f32 accumulation tolerance

    # Exercise the padding path: pixel count not a multiple of 128.
    feat_p = 2.0 * jax.random.normal(kg, (2, my, 300), jnp.float32)
    core_p = scn_core(feat_p.astype(jnp.bfloat16), w_eff, s_aug, dx_eff, k=cfg['k'])
    ref_p = scn_core_ref(feat_p, params['W'], params['S'], params['Dx'],
                         theta_t, cfg['k'])
    assert core_p.shape == (2, mx, 300), core_p.shape
    rel_err_p = float(jnp.max(jnp.abs(core_p.astype(jnp.float32) - ref_p)) /
                      jnp.max(jnp.abs(ref_p)))
    assert rel_err_p < 5e-2, rel_err_p

    jax.block_until_ready((core, core_p))
    print("KERNEL_OK")
</pallas_src>

<mosaic_0001>
module attributes {stable_mosaic.version = 11 : i64} {
  func.func @scn_core_kernel(%arg0: i32, %arg1: i32, %arg2: memref<1x8x256xbf16, #tpu.memory_space<vmem>>, %arg3: memref<32x8xbf16, #tpu.memory_space<vmem>>, %arg4: memref<32x64xbf16, #tpu.memory_space<vmem>>, %arg5: memref<16x32xbf16, #tpu.memory_space<vmem>>, %arg6: memref<1x16x256xbf16, #tpu.memory_space<vmem>>, %arg7: memref<64x256xbf16, #tpu.memory_space<vmem>>) attributes {dimension_semantics = [#tpu.dimension_semantics<parallel>, #tpu.dimension_semantics<parallel>], iteration_bounds = array<i64: 2, 1>, scalar_prefetch = 0 : i64, scratch_operands = 1 : i64, tpu.core_type = #tpu.core_type<tc>, window_params = [{transform_indices = @transform_0, window_bounds = array<i64: 1, 8, 256>}, {pipeline_mode = #tpu.pipeline_mode<synchronous>, transform_indices = @transform_1, window_bounds = array<i64: 32, 8>}, {pipeline_mode = #tpu.pipeline_mode<synchronous>, transform_indices = @transform_2, window_bounds = array<i64: 32, 64>}, {pipeline_mode = #tpu.pipeline_mode<synchronous>, transform_indices = @transform_3, window_bounds = array<i64: 16, 32>}, {transform_indices = @transform_4, window_bounds = array<i64: 1, 16, 256>}]} {
    %c0 = arith.constant 0 : index
    %c0_0 = arith.constant 0 : index
    %c0_1 = arith.constant 0 : index
    %0 = vector.load %arg2[%c0, %c0_0, %c0_1] : memref<1x8x256xbf16, #tpu.memory_space<vmem>>, vector<1x8x256xbf16>
    %1 = vector.shape_cast %0 : vector<1x8x256xbf16> to vector<8x256xbf16>
    %c0_2 = arith.constant 0 : index
    %c0_3 = arith.constant 0 : index
    %2 = vector.load %arg3[%c0_2, %c0_3] : memref<32x8xbf16, #tpu.memory_space<vmem>>, vector<32x8xbf16>
    %c0_4 = arith.constant 0 : index
    %c0_5 = arith.constant 0 : index
    %3 = vector.load %arg4[%c0_4, %c0_5] : memref<32x64xbf16, #tpu.memory_space<vmem>>, vector<32x64xbf16>
    %c0_6 = arith.constant 0 : index
    %c0_7 = arith.constant 0 : index
    %4 = vector.load %arg5[%c0_6, %c0_7] : memref<16x32xbf16, #tpu.memory_space<vmem>>, vector<16x32xbf16>
    %cst = arith.constant dense<0.000000e+00> : vector<32x256xf32>
    %5 = tpu.matmul %2, %1, %cst {dimension_numbers = #tpu.dot_dimension_numbers<[1], [0], [0], [1], [0, 0, 1, 1], [], []>} : vector<32x8xbf16>, vector<8x256xbf16>, vector<32x256xf32> -> vector<32x256xf32>
    %6 = arith.truncf %5 : vector<32x256xf32> to vector<32x256xbf16>
    %c32 = arith.constant 32 : index
    %c0_8 = arith.constant 0 : index
    %7 = vector.load %arg7[%c32, %c0_8] : memref<64x256xbf16, #tpu.memory_space<vmem>>, vector<32x256xbf16>
    tpu.vector_store %arg7[%c32, %c0_8], %6 {strides = array<i32>} : memref<64x256xbf16, #tpu.memory_space<vmem>>, vector<32x256xbf16>,
    %cst_9 = arith.constant -1.000000e+00 : f32
    %cst_10 = arith.constant 1.000000e+00 : f32
    %8 = vector.broadcast %cst_9 : f32 to vector<32x256xf32>
    %9 = arith.maximumf %8, %5 : vector<32x256xf32>
    %10 = vector.broadcast %cst_10 : f32 to vector<32x256xf32>
    %11 = arith.minimumf %10, %9 : vector<32x256xf32>
    %12 = arith.subf %5, %11 : vector<32x256xf32>
    %13 = arith.truncf %12 : vector<32x256xf32> to vector<32x256xbf16>
    %c0_11 = arith.constant 0 : index
    %c0_12 = arith.constant 0 : index
    %14 = vector.load %arg7[%c0_11, %c0_12] : memref<64x256xbf16, #tpu.memory_space<vmem>>, vector<32x256xbf16>
    tpu.vector_store %arg7[%c0_11, %c0_12], %13 {strides = array<i32>} : memref<64x256xbf16, #tpu.memory_space<vmem>>, vector<32x256xbf16>,
    %c0_13 = arith.constant 0 : index
    %c0_14 = arith.constant 0 : index
    %15 = vector.load %arg7[%c0_13, %c0_14] : memref<64x256xbf16, #tpu.memory_space<vmem>>, vector<64x256xbf16>
    %cst_15 = arith.constant dense<0.000000e+00> : vector<32x256xf32>
    %16 = tpu.matmul %3, %15, %cst_15 {dimension_numbers = #tpu.dot_dimension_numbers<[1], [0], [0], [1], [0, 0, 1, 1], [], []>} : vector<32x64xbf16>, vector<64x256xbf16>, vector<32x256xf32> -> vector<32x256xf32>
    %cst_16 = arith.constant -1.000000e+00 : f32
    %cst_17 = arith.constant 1.000000e+00 : f32
    %17 = vector.broadcast %cst_16 : f32 to vector<32x256xf32>
    %18 = arith.maximumf %17, %16 : vector<32x256xf32>
    %19 = vector.broadcast %cst_17 : f32 to vector<32x256xf32>
    %20 = arith.minimumf %19, %18 : vector<32x256xf32>
    %21 = arith.subf %16, %20 : vector<32x256xf32>
    %22 = arith.truncf %21 : vector<32x256xf32> to vector<32x256xbf16>
    %c0_18 = arith.constant 0 : index
    %c0_19 = arith.constant 0 : index
    %23 = vector.load %arg7[%c0_18, %c0_19] : memref<64x256xbf16, #tpu.memory_space<vmem>>, vector<32x256xbf16>
    tpu.vector_store %arg7[%c0_18, %c0_19], %22 {strides = array<i32>} : memref<64x256xbf16, #tpu.memory_space<vmem>>, vector<32x256xbf16>,
    %c0_20 = arith.constant 0 : index
    %c0_21 = arith.constant 0 : index
    %24 = vector.load %arg7[%c0_20, %c0_21] : memref<64x256xbf16, #tpu.memory_space<vmem>>, vector<64x256xbf16>
    %cst_22 = arith.constant dense<0.000000e+00> : vector<32x256xf32>
    %25 = tpu.matmul %3, %24, %cst_22 {dimension_numbers = #tpu.dot_dimension_numbers<[1], [0], [0], [1], [0, 0, 1, 1], [], []>} : vector<32x64xbf16>, vector<64x256xbf16>, vector<32x256xf32> -> vector<32x256xf32>
    %cst_23 = arith.constant -1.000000e+00 : f32
    %cst_24 = arith.constant 1.000000e+00 : f32
    %26 = vector.broadcast %cst_23 : f32 to vector<32x256xf32>
    %27 = arith.maximumf %26, %25 : vector<32x256xf32>
    %28 = vector.broadcast %cst_24 : f32 to vector<32x256xf32>
    %29 = arith.minimumf %28, %27 : vector<32x256xf32>
    %30 = arith.subf %25, %29 : vector<32x256xf32>
    %31 = arith.truncf %30 : vector<32x256xf32> to vector<32x256xbf16>
    %c0_25 = arith.constant 0 : index
    %c0_26 = arith.constant 0 : index
    %32 = vector.load %arg7[%c0_25, %c0_26] : memref<64x256xbf16, #tpu.memory_space<vmem>>, vector<32x256xbf16>
    tpu.vector_store %arg7[%c0_25, %c0_26], %31 {strides = array<i32>} : memref<64x256xbf16, #tpu.memory_space<vmem>>, vector<32x256xbf16>,
    %c0_27 = arith.constant 0 : index
    %c0_28 = arith.constant 0 : index
    %33 = vector.load %arg7[%c0_27, %c0_28] : memref<64x256xbf16, #tpu.memory_space<vmem>>, vector<64x256xbf16>
    %cst_29 = arith.constant dense<0.000000e+00> : vector<32x256xf32>
    %34 = tpu.matmul %3, %33, %cst_29 {dimension_numbers = #tpu.dot_dimension_numbers<[1], [0], [0], [1], [0, 0, 1, 1], [], []>} : vector<32x64xbf16>, vector<64x256xbf16>, vector<32x256xf32> -> vector<32x256xf32>
    %cst_30 = arith.constant -1.000000e+00 : f32
    %cst_31 = arith.constant 1.000000e+00 : f32
    %35 = vector.broadcast %cst_30 : f32 to vector<32x256xf32>
    %36 = arith.maximumf %35, %34 : vector<32x256xf32>
    %37 = vector.broadcast %cst_31 : f32 to vector<32x256xf32>
    %38 = arith.minimumf %37, %36 : vector<32x256xf32>
    %39 = arith.subf %34, %38 : vector<32x256xf32>
    %40 = arith.truncf %39 : vector<32x256xf32> to vector<32x256xbf16>
    %cst_32 = arith.constant dense<0.000000e+00> : vector<16x256xf32>
    %41 = tpu.matmul %4, %40, %cst_32 {dimension_numbers = #tpu.dot_dimension_numbers<[1], [0], [0], [1], [0, 0, 1, 1], [], []>} : vector<16x32xbf16>, vector<32x256xbf16>, vector<16x256xf32> -> vector<16x256xf32>
    %42 = arith.truncf %41 : vector<16x256xf32> to vector<16x256xbf16>
    %c0_33 = arith.constant 0 : index
    %c0_34 = arith.constant 0 : index
    %c0_35 = arith.constant 0 : index
    %43 = vector.load %arg6[%c0_33, %c0_34, %c0_35] : memref<1x16x256xbf16, #tpu.memory_space<vmem>>, vector<1x16x256xbf16>
    %44 = vector.shape_cast %43 : vector<1x16x256xbf16> to vector<16x256xbf16>
    %45 = vector.shape_cast %42 : vector<16x256xbf16> to vector<1x16x256xbf16>
    tpu.vector_store %arg6[%c0_33, %c0_34, %c0_35], %45 {strides = array<i32>} : memref<1x16x256xbf16, #tpu.memory_space<vmem>>, vector<1x16x256xbf16>,
    return
  }
  func.func @transform_0(%arg0: i32, %arg1: i32) -> (i32, i32, i32) {
    %c0_i32 = arith.constant 0 : i32
    %c0_i32_0 = arith.constant 0 : i32
    return %arg0, %c0_i32, %arg1 : i32, i32, i32
  }
  func.func @transform_1(%arg0: i32, %arg1: i32) -> (i32, i32) {
    %c0_i32 = arith.constant 0 : i32
    %c0_i32_0 = arith.constant 0 : i32
    %c0_i32_1 = arith.constant 0 : i32
    return %c0_i32, %c0_i32_0 : i32, i32
  }
  func.func @transform_2(%arg0: i32, %arg1: i32) -> (i32, i32) {
    %c0_i32 = arith.constant 0 : i32
    %c0_i32_0 = arith.constant 0 : i32
    %c0_i32_1 = arith.constant 0 : i32
    return %c0_i32, %c0_i32_0 : i32, i32
  }
  func.func @transform_3(%arg0: i32, %arg1: i32) -> (i32, i32) {
    %c0_i32 = arith.constant 0 : i32
    %c0_i32_0 = arith.constant 0 : i32
    %c0_i32_1 = arith.constant 0 : i32
    return %c0_i32, %c0_i32_0 : i32, i32
  }
  func.func @transform_4(%arg0: i32, %arg1: i32) -> (i32, i32, i32) {
    %c0_i32 = arith.constant 0 : i32
    %c0_i32_0 = arith.constant 0 : i32
    return %arg0, %c0_i32, %arg1 : i32, i32, i32
  }
}

</mosaic_0001>

<bundles_post_ra>
// kernel: tpu_custom_call.1
= control target key start
LH: loop header
LB: loop body
LE: loop exit
PB: predicated region body
PF: predicated region fallthrough
CT: control target
= control target key end

     0   :  { %9 = vsyncpa [#allocation4], 0  ;;  %s1539_s0 = inlined_call_operand.vmem [shape: bf16[2,8,256], index: 0, kind: input, shape index: {}]   ;;  %s1540_s1 = inlined_call_operand.vmem [shape: bf16[32,8], index: 1, kind: input, shape index: {}]   ;;  %s1541_s2 = inlined_call_operand.hbm [shape: bf16[32,64], index: 2, kind: input, shape index: {}]   ;;  %s1542_s3 = inlined_call_operand.hbm [shape: bf16[16,32], index: 3, kind: input, shape index: {}]   ;;  %s1543_s4 = inlined_call_operand.hbm [shape: bf16[2,16,256], index: 4, kind: output, shape index: {}]  }
   0x1   :  { %10 = vsyncpa [#allocation7], 0 }
   0x2   :  { %11 = vsyncpa [#allocation5], 0 }
   0x3   :  { %13 = vsyncpa [#allocation5 + $0x1], 0  ;;  %s1380_s15 = smov 0   ;;  %s1382_s16 = smov 0  }
   0x4   :  { %s1384_s17 = smov 0   ;;  %s1386_s18 = smov 0  }
   0x5   :  { %s1388_s19 = smov 0   ;;  %s1390_s20 = smov 0  }
   0x6 LB: > { %s907_s21 = sadd.s32 4294967295, %s1347_s20   ;;  %s908_s22 = sadd.s32 4294967294, %s1347_s20   ;;  %s1347_s20 = sphi %s1390_s20, %s19_s20   ;;  %s1343_s19 = sphi %s1388_s19, %s1552_s19   ;;  %s1339_s18 = sphi %s1386_s18, %s1551_s18   ;;  %s1335_s17 = sphi %s1384_s17, %s1550_s17   ;;  %s1331_s16 = sphi %s1382_s16, %s1549_s16   ;;  %s1327_s15 = sphi %s1380_s15, %s1548_s15  }
   0x7   : > { %s31_s23 = sadd.s32 1, %s1343_s19  ;;  %s131_s24 = sadd.s32 1, %s1335_s17 }
   0x8   : > { %p33_p0 = scmp.ge.s32.totalorder %s31_s23, 2  ;;  %p141_p1 = scmp.ne.s32.totalorder %s1335_s17, %s1331_s16 }
   0x9   : > { %p142_p2 = scmp.eq.s32.totalorder %s907_s21, 1  ;;  %p147_p3 = scmp.ne.s32.totalorder %s1331_s16, %s1327_s15 }
   0xa   : > { %s1554_s23 = smov (%p33_p0, %s31_s23), 0  ;;  %p148_p5 = scmp.eq.s32.totalorder %s908_s22, 1 }
   0xb   : > { %p1420_p4 = por %p142_p2, %p141_p1  ;;  %s126_s26 = ssub.s32 %s1343_s19, %s1554_s23 }
   0xc   : > { %p909_p6 = scmp.ge.s32.totalorder %s1347_s20, 1  ;;  %p129_p7 = scmp.eq.s32.totalorder %s126_s26, 0 }
   0xd   : > { %p1427_p8 = por %p148_p5, %p147_p3  ;;  %p155_p9 = scmp.lt.s32.totalorder %s1347_s20, 3 }
   0xe   : > { %s1433_s28 = scalar_select %p129_p7, %s1335_s17, %s131_s24  }
   0xf   : > { %p1435_p10 = pnand %p909_p6, %p155_p9  ;;  %p1439_p11 = scmp.eq.s32.totalorder %s907_s21, 0 }
  0x10   : > { %s169_s7 = sshll.u32 %s1541_s2, 4  ;;  %s1349_s8 = smov [#allocation3]   ;;  %s170_s7 = int_to_ptr.hbm [resolvable:$true] %s169_s7 }
  0x11   : > { %p1131_p12 = pneg %p1435_p10  ;;  %s171_s9 = sshll.u32 %s1349_s8, 4  ;;  %s172_s9 = int_to_ptr.vmem [resolvable:$true] %s171_s9 }
  0x12   : > { %s183_s12 = sshll.u32 %s1542_s3, 4  ;;  %s1350_s13 = smov 64   ;;  %s184_s12 = int_to_ptr.hbm [resolvable:$true] %s183_s12 }
  0x13   : > { %p1132_p13 = pnand %p1439_p11, %p1131_p12  ;;  %s1351_s14 = smov 4  }
  0x14   : > { %s1352_s21 = smov [#allocation6]   ;;  %214 = sbr.rel (%p1435_p10) target bundleno = 881 (0x371), region = 36 }
  0x15   : > { %1134 = dma.hbm_to_vmem [thread:$0]  (!%p1132_p13), %s170_s7, 256, %s172_s9, [#allocation4], %s1350_s13, %s1350_s13, %s1351_s14  }
  0x16   : > { %s185_s22 = sshll.u32 %s1352_s21, 4  ;;  %s186_s22 = int_to_ptr.vmem [resolvable:$true] %s185_s22 }
  0x17   : > { %1137 = dma.hbm_to_vmem [thread:$0]  (!%p1132_p13), %s184_s12, 128, %s186_s22, [#allocation7], %s1350_s13, %s1350_s13, %s1351_s14  }
  0x19   : > { %1314 = dma.done.wait (%p1439_p11), [#allocation4], 256  }
  0x1a   : > { %1316 = vsyncadd (%p1439_p11), [#allocation4], 4294967040 }
  0x1b   : > { %1318 = dma.done.wait (%p1439_p11), [#allocation7], 128  }
  0x1c   : > { %1320 = vsyncadd (%p1439_p11), [#allocation7], 4294967168  ;;  %p251_p0 = scmp.lt.s32.totalorder %s1339_s18, 1  ;;  %vm295_vm0 = vcmask 1043456   ;;  %v1091_v7 = vld [vmem:[%s1540_s1] sm:$0xff]  ;;  %vm288_vm1 = vcmask 64512  }
  0x1d   : > { %v1092_v8 = vld [vmem:[%s1540_s1 + $0x8] sm:$0xff]  ;;  %vm438_vm2 = vcmask 523264   ;;  %vm752_vm3 = vcmask 261120   ;;  %s247_s10 = sand.u32 1, %s1331_s16   ;;  %s1120_s12 = sshll.u32 %s1339_s18, 4 }
  0x1e   : > { %s252_s24 = scalar_select %p251_p0, %s1339_s18, 1 }
  0x1f   : > { %s916_s11 = sshll.u32 %s247_s10, 4  ;;  %s802_s22 = scalar_lea.hbm %s1543_s4, %s1120_s12 }
  0x20   : > { %s1090_s26 = sshll.u32 %s252_s24, 3  ;;  %s249_s13 = scalar_lea.vmem [#allocation8], %s916_s11 }
  0x21   : > { %s258_s6 = scalar_lea.vmem %s1539_s0, %s1090_s26  ;;  %s803_s24 = sshll.u32 %s249_s13, 4  ;;  %s804_s24 = int_to_ptr.vmem [resolvable:$true] %s803_s24 }
  0x22   : > { %v262_v0 = vld [vmem:[%s258_s6] sm:$0xff]  ;;  %s805_s26 = sshll.u32 %s802_s22, 4  ;;  %s789_s5 = scalar_lea.sflag [#allocation5], %s247_s10  ;;  %s806_s26 = int_to_ptr.hbm [resolvable:$true] %s805_s26 }
  0x23   : > { %v284_v1 = vunpack.c.l.b16 %v262_v0  ;;  %v285_v2 = vunpack.c.h.b16 %v262_v0  ;;  %s1275_s29 = sshra.s32 %s806_s26, 4  ;;  %s1281_s30 = scalar_lea.hbm %s1543_s4, 32  ;;  %s1276_s29 = int_to_ptr.hbm [resolvable:$true] %s1275_s29 }
  0x24   : > { %s1277_s18 = scalar_lea.hbm %s1276_s29, 16  ;;  %p1282_p5 = scmp.lt.s32.totalorder %s1276_s29, %s1543_s4 }
  0x25   : > { %v286_v3 = vpack.c.b16 %v284_v1, %v284_v1  ;;  %v287_v4 = vpack.c.b16 %v285_v2, %v285_v2  ;;  %p1278_p1 = scmp.ne.s32.totalorder %s1276_s29, %s1277_s18  ;;  %p1283_p6 = scmp.lt.s32.totalorder %s1281_s30, %s1277_s18 }
  0x27   : > { %v297_v5 = vsel %vm295_vm0, %v286_v3, 0  ;;  %v300_v6 = vsel %vm295_vm0, %v287_v4, 0  ;;  %p1279_p2 = pnand %p1278_p1, %p1420_p4  ;;  %p1284_p7 = por %p1283_p6, %p1282_p5 }
  0x28   : > { %309 = vmatpush.bf16.msra.mxu0 %v297_v5  ;;  %328 = vmatpush.bf16.msra.mxu1 %v300_v6 }
  0x29   : > { %p1280_p3 = pneg %p1279_p2 }
  0x2b   : > { %927 = vmatmul.msk.bf16.vlgmr.msra.gmra.mxu0 %vm288_vm1, %v1091_v7  ;;  %929 = vmatmul.msk.bf16.vlgmr.msra.gmra.mxu1 %vm288_vm1, %v1091_v7  ;;  %p1285_p9 = pnand %p1284_p7, %p1280_p3 }
  0x3b   : > { %928 = vmatmul.msk.bf16.gmra.mxu0 %vm288_vm1, %v1092_v8  ;;  %930 = vmatmul.msk.bf16.gmra.mxu1 %vm288_vm1, %v1092_v8 }
  0xa8   : > { %v311_v9 = vpop.f32.mrf.mxu0  ;;  %v330_v10 = vpop.f32.mrf.mxu1 }
  0xa9   : > { %v931_v11 = vclamps-f32 %v311_v9, 1.0  ;;  %v340_v12 = vpack.c.bf16 %v330_v10, %v311_v9  ;;  %v932_v13 = vclamps-f32 %v330_v10, 1.0 }
  0xab   : > { %v364_v14 = vsub.f32 %v311_v9, %v931_v11  ;;  %344 = vst [vmem:[#allocation2 + $0x20] sm:$0xff] %v340_v12  ;;  %v365_v15 = vsub.f32 %v330_v10, %v932_v13 }
  0xad   : > { %v372_v16 = vpack.c.bf16 %v365_v15, %v364_v14 }
  0xaf   : > { %376 = vst [vmem:[#allocation2] sm:$0xff] %v372_v16 }
  0xb0   : > { %v313_v17 = vpop.f32.mrf.mxu0  ;;  %v332_v18 = vpop.f32.mrf.mxu1 }
  0xb1   : > { %v933_v19 = vclamps-f32 %v313_v17, 1.0  ;;  %v341_v20 = vpack.c.bf16 %v332_v18, %v313_v17  ;;  %v934_v21 = vclamps-f32 %v332_v18, 1.0 }
  0xb2   : > { %v965_v57 = vld [vmem:[#allocation2 + $0x20] sm:$0xf]  ;;  %v1100_v58 = vld [vmem:[#allocation2 + $0x24] sm:$0xf] }
  0xb3   : > { %v366_v22 = vsub.f32 %v313_v17, %v933_v19  ;;  %345 = vst [vmem:[#allocation2 + $0x28] sm:$0xff] %v341_v20  ;;  %v367_v23 = vsub.f32 %v332_v18, %v934_v21  ;;  %v1009_v61 = vld [vmem:[#allocation2 + $0x20] sm:$0xf]  ;;  %v1108_v62 = vld [vmem:[#allocation2 + $0x24] sm:$0xf] }
  0xb4   : > { %v1474_v19 = vld [vmem:[#allocation3] sm:$0xff] }
  0xb5   : > { %v373_v24 = vpack.c.bf16 %v367_v23, %v366_v22  ;;  %v1053_v22 = vld [vmem:[#allocation2 + $0x20] sm:$0xf]  ;;  %v1116_v23 = vld [vmem:[#allocation2 + $0x24] sm:$0xf] }
  0xb6   : > { %v949_v11 = vld [vmem:[#allocation2] sm:$0xf]  ;;  %v1096_v12 = vld [vmem:[#allocation2 + $0x4] sm:$0xf] }
  0xb7   : > { %377 = vst [vmem:[#allocation2 + $0x8] sm:$0xff] %v373_v24 }
  0xb8   : > { %v316_v25 = vpop.f32.mrf.mxu0  ;;  %v335_v26 = vpop.f32.mrf.mxu1 }
  0xb9   : > { %v935_v27 = vclamps-f32 %v316_v25, 1.0  ;;  %v342_v28 = vpack.c.bf16 %v335_v26, %v316_v25  ;;  %v936_v29 = vclamps-f32 %v335_v26, 1.0 }
  0xba   : > { %v1101_v53 = vld [vmem:[#allocation2 + $0x24] sm:$0xf0]  ;;  %v967_v54 = vld [vmem:[#allocation2 + $0x28] sm:$0xf0] }
  0xbb   : > { %v368_v30 = vsub.f32 %v316_v25, %v935_v27  ;;  %346 = vst [vmem:[#allocation2 + $0x30] sm:$0xff] %v342_v28  ;;  %v369_v31 = vsub.f32 %v335_v26, %v936_v29  ;;  %v1109_v55 = vld [vmem:[#allocation2 + $0x24] sm:$0xf0]  ;;  %v1011_v56 = vld [vmem:[#allocation2 + $0x28] sm:$0xf0]  ;;  %v966_v59 = vor.u32 %v1101_v53, %v965_v57  ;;  %v970_v60 = vor.u32 %v1100_v58, %v967_v54 }
  0xbc   : > { %v1010_v63 = vor.u32 %v1109_v55, %v1009_v61  ;;  %v1014_v0 = vor.u32 %v1108_v62, %v1011_v56  ;;  %v1117_v20 = vld [vmem:[#allocation2 + $0x24] sm:$0xf0]  ;;  %v1055_v21 = vld [vmem:[#allocation2 + $0x28] sm:$0xf0] }
  0xbd   : > { %v374_v32 = vpack.c.bf16 %v369_v31, %v368_v30  ;;  %v1054_v24 = vor.u32 %v1117_v20, %v1053_v22  ;;  %v1058_v25 = vor.u32 %v1116_v23, %v1055_v21  ;;  %v1480_v26 = vld [vmem:[#allocation3 + $0x8] sm:$0xff] }
  0xbe   : > { %v1097_v7 = vld [vmem:[#allocation2 + $0x4] sm:$0xf0]  ;;  %v951_v8 = vld [vmem:[#allocation2 + $0x8] sm:$0xf0] }
  0xbf   : > { %378 = vst [vmem:[#allocation2 + $0x10] sm:$0xff] %v374_v32  ;;  %v950_v13 = vor.u32 %v1097_v7, %v949_v11  ;;  %v954_v14 = vor.u32 %v1096_v12, %v951_v8 }
  0xc0   : > { %v318_v33 = vpop.f32.mrf.mxu0  ;;  %v337_v34 = vpop.f32.mrf.mxu1 }
  0xc1   : > { %v937_v35 = vclamps-f32 %v318_v33, 1.0  ;;  %v343_v36 = vpack.c.bf16 %v337_v34, %v318_v33  ;;  %v938_v37 = vclamps-f32 %v337_v34, 1.0 }
  0xc2   : > { %v973_v41 = vld [vmem:[#allocation2 + $0x30] sm:$0xf]  ;;  %v1102_v42 = vld [vmem:[#allocation2 + $0x34] sm:$0xf] }
  0xc3   : > { %v370_v38 = vsub.f32 %v318_v33, %v937_v35  ;;  %347 = vst [vmem:[#allocation2 + $0x38] sm:$0xff] %v343_v36  ;;  %v371_v39 = vsub.f32 %v337_v34, %v938_v37  ;;  %v1017_v43 = vld [vmem:[#allocation2 + $0x30] sm:$0xf]  ;;  %v1110_v50 = vld [vmem:[#allocation2 + $0x34] sm:$0xf] }
  0xc4   : > { %v1061_v15 = vld [vmem:[#allocation2 + $0x30] sm:$0xf]  ;;  %v1118_v16 = vld [vmem:[#allocation2 + $0x34] sm:$0xf] }
  0xc5   : > { %v375_v40 = vpack.c.bf16 %v371_v39, %v370_v38 }
  0xc6   : > { %v957_v3 = vld [vmem:[#allocation2 + $0x10] sm:$0xf]  ;;  %v1098_v4 = vld [vmem:[#allocation2 + $0x14] sm:$0xf] }
  0xc7   : > { %379 = vst [vmem:[#allocation2 + $0x18] sm:$0xff] %v375_v40 }
  0xca   : > { %v1103_v44 = vld [vmem:[#allocation2 + $0x34] sm:$0xf0]  ;;  %v975_v45 = vld [vmem:[#allocation2 + $0x38] sm:$0xf0] }
  0xcb   : > { %v1111_v46 = vld [vmem:[#allocation2 + $0x34] sm:$0xf0]  ;;  %v974_v47 = vor.u32 %v1103_v44, %v973_v41  ;;  %v978_v48 = vor.u32 %v1102_v42, %v975_v45  ;;  %v1019_v51 = vld [vmem:[#allocation2 + $0x38] sm:$0xf0] }
  0xcc   : > { %v1018_v49 = vor.u32 %v1111_v46, %v1017_v43  ;;  %v1022_v52 = vor.u32 %v1110_v50, %v1019_v51  ;;  %v1119_v9 = vld [vmem:[#allocation2 + $0x34] sm:$0xf0]  ;;  %v1063_v10 = vld [vmem:[#allocation2 + $0x38] sm:$0xf0] }
  0xcd   : > { %449 = vmatpush.bf16.msra.mxu2 %v974_v47  ;;  %468 = vmatpush.bf16.msra.mxu3 %v978_v48  ;;  %v1062_v17 = vor.u32 %v1119_v9, %v1061_v15  ;;  %v1066_v18 = vor.u32 %v1118_v16, %v1063_v10 }
  0xce   : > { %567 = vmatpush.bf16.msrb.mxu0 %v1018_v49  ;;  %586 = vmatpush.bf16.msrb.mxu1 %v1022_v52  ;;  %v1099_v1 = vld [vmem:[#allocation2 + $0x14] sm:$0xf0]  ;;  %v959_v2 = vld [vmem:[#allocation2 + $0x18] sm:$0xf0] }
  0xcf   : > { %v958_v5 = vor.u32 %v1099_v1, %v957_v3  ;;  %v962_v6 = vor.u32 %v1098_v4, %v959_v2 }
  0xd1   : > { %450 = vmatpush.bf16.msra.mxu2 %v966_v59  ;;  %469 = vmatpush.bf16.msra.mxu3 %v970_v60 }
  0xd2   : > { %568 = vmatpush.bf16.msrb.mxu0 %v1010_v63  ;;  %587 = vmatpush.bf16.msrb.mxu1 %v1014_v0 }
  0xd5   : > { %451 = vmatpush.bf16.msra.mxu2 %v958_v5  ;;  %470 = vmatpush.bf16.msra.mxu3 %v962_v6 }
  0xd9   : > { %452 = vmatpush.bf16.msra.mxu2 %v950_v13  ;;  %471 = vmatpush.bf16.msra.mxu3 %v954_v14 }
  0xdc   : > { %979 = vmatmul.msk.bf16.vlgmr.msra.gmra.mxu2 %vm438_vm2, %v1474_v19  ;;  %981 = vmatmul.msk.bf16.vlgmr.msra.gmra.mxu3 %vm438_vm2, %v1474_v19 }
  0xdd   : > { %685 = vmatpush.bf16.msrb.mxu2 %v1062_v17  ;;  %704 = vmatpush.bf16.msrb.mxu3 %v1066_v18 }
  0xe1   : > { %686 = vmatpush.bf16.msrb.mxu2 %v1054_v24  ;;  %705 = vmatpush.bf16.msrb.mxu3 %v1058_v25 }
  0xec   : > { %980 = vmatmul.msk.bf16.gmra.mxu2 %vm438_vm2, %v1480_v26  ;;  %982 = vmatmul.msk.bf16.gmra.mxu3 %vm438_vm2, %v1480_v26 }
 0x15f   : > { %v454_v27 = vpop.f32.mrf.mxu2  ;;  %v473_v28 = vpop.f32.mrf.mxu3 }
 0x160   : > { %v983_v29 = vclamps-f32 %v454_v27, 1.0  ;;  %v984_v30 = vclamps-f32 %v473_v28, 1.0 }
 0x162   : > { %v499_v31 = vsub.f32 %v454_v27, %v983_v29  ;;  %v500_v32 = vsub.f32 %v473_v28, %v984_v30 }
 0x164   : > { %v507_v33 = vpack.c.bf16 %v500_v32, %v499_v31 }
 0x166   : > { %511 = vst [vmem:[#allocation2] sm:$0xff] %v507_v33 }
 0x167   : > { %v456_v34 = vpop.f32.mrf.mxu2  ;;  %v475_v35 = vpop.f32.mrf.mxu3 }
 0x168   : > { %v985_v36 = vclamps-f32 %v456_v34, 1.0  ;;  %v986_v37 = vclamps-f32 %v475_v35, 1.0 }
 0x16a   : > { %v501_v38 = vsub.f32 %v456_v34, %v985_v36  ;;  %v502_v39 = vsub.f32 %v475_v35, %v986_v37 }
 0x16c   : > { %v508_v40 = vpack.c.bf16 %v502_v39, %v501_v38 }
 0x16d   : > { %v993_v63 = vld [vmem:[#allocation2] sm:$0xf]  ;;  %v1104_v0 = vld [vmem:[#allocation2 + $0x4] sm:$0xf] }
 0x16e   : > { %512 = vst [vmem:[#allocation2 + $0x8] sm:$0xff] %v508_v40 }
 0x16f   : > { %v459_v41 = vpop.f32.mrf.mxu2  ;;  %v478_v42 = vpop.f32.mrf.mxu3 }
 0x170   : > { %v987_v43 = vclamps-f32 %v459_v41, 1.0  ;;  %v988_v44 = vclamps-f32 %v478_v42, 1.0 }
 0x172   : > { %v503_v45 = vsub.f32 %v459_v41, %v987_v43  ;;  %v504_v46 = vsub.f32 %v478_v42, %v988_v44 }
 0x174   : > { %v509_v47 = vpack.c.bf16 %v504_v46, %v503_v45 }
 0x175   : > { %v1105_v61 = vld [vmem:[#allocation2 + $0x4] sm:$0xf0]  ;;  %v995_v62 = vld [vmem:[#allocation2 + $0x8] sm:$0xf0] }
 0x176   : > { %513 = vst [vmem:[#allocation2 + $0x10] sm:$0xff] %v509_v47  ;;  %v994_v1 = vor.u32 %v1105_v61, %v993_v63  ;;  %v998_v2 = vor.u32 %v1104_v0, %v995_v62 }
 0x177   : > { %v461_v48 = vpop.f32.mrf.mxu2  ;;  %v480_v49 = vpop.f32.mrf.mxu3 }
 0x178   : > { %v989_v50 = vclamps-f32 %v461_v48, 1.0  ;;  %v990_v51 = vclamps-f32 %v480_v49, 1.0 }
 0x17a   : > { %v505_v52 = vsub.f32 %v461_v48, %v989_v50  ;;  %v506_v53 = vsub.f32 %v480_v49, %v990_v51 }
 0x17c   : > { %v510_v54 = vpack.c.bf16 %v506_v53, %v505_v52 }
 0x17d   : > { %v1001_v55 = vld [vmem:[#allocation2 + $0x10] sm:$0xf]  ;;  %v1106_v57 = vld [vmem:[#allocation2 + $0x14] sm:$0xf] }
 0x17e   : > { %514 = vst [vmem:[#allocation2 + $0x18] sm:$0xff] %v510_v54 }
 0x185   : > { %v1107_v56 = vld [vmem:[#allocation2 + $0x14] sm:$0xf0]  ;;  %v1003_v58 = vld [vmem:[#allocation2 + $0x18] sm:$0xf0] }
 0x186   : > { %v1002_v59 = vor.u32 %v1107_v56, %v1001_v55  ;;  %v1006_v60 = vor.u32 %v1106_v57, %v1003_v58 }
 0x188   : > { %569 = vmatpush.bf16.msrb.mxu0 %v1002_v59  ;;  %588 = vmatpush.bf16.msrb.mxu1 %v1006_v60 }
 0x18c   : > { %570 = vmatpush.bf16.msrb.mxu0 %v994_v1  ;;  %589 = vmatpush.bf16.msrb.mxu1 %v998_v2 }
 0x18f   : > { %1023 = vmatmul.msk.bf16.vlgmr.msrb.gmra.mxu0 %vm438_vm2, %v1474_v19  ;;  %1025 = vmatmul.msk.bf16.vlgmr.msrb.gmra.mxu1 %vm438_vm2, %v1474_v19 }
 0x19f   : > { %1024 = vmatmul.msk.bf16.gmra.mxu0 %vm438_vm2, %v1480_v26  ;;  %1026 = vmatmul.msk.bf16.gmra.mxu1 %vm438_vm2, %v1480_v26 }
 0x20c   : > { %v572_v3 = vpop.f32.mrf.mxu0  ;;  %v591_v4 = vpop.f32.mrf.mxu1 }
 0x20d   : > { %v1027_v5 = vclamps-f32 %v572_v3, 1.0  ;;  %v1028_v6 = vclamps-f32 %v591_v4, 1.0 }
 0x20f   : > { %v617_v7 = vsub.f32 %v572_v3, %v1027_v5  ;;  %v618_v8 = vsub.f32 %v591_v4, %v1028_v6 }
 0x211   : > { %v625_v9 = vpack.c.bf16 %v618_v8, %v617_v7  ;;  %v1095_v7 = vld [vmem:[#allocation6] sm:$0xff] }
 0x213   : > { %629 = vst [vmem:[#allocation2] sm:$0xff] %v625_v9 }
 0x214   : > { %v574_v10 = vpop.f32.mrf.mxu0  ;;  %v593_v11 = vpop.f32.mrf.mxu1 }
 0x215   : > { %v1029_v12 = vclamps-f32 %v574_v10, 1.0  ;;  %v1030_v13 = vclamps-f32 %v593_v11, 1.0 }
 0x217   : > { %v619_v14 = vsub.f32 %v574_v10, %v1029_v12  ;;  %v620_v15 = vsub.f32 %v593_v11, %v1030_v13 }
 0x219   : > { %v626_v16 = vpack.c.bf16 %v620_v15, %v619_v14 }
 0x21a   : > { %v1037_v41 = vld [vmem:[#allocation2] sm:$0xf]  ;;  %v1112_v42 = vld [vmem:[#allocation2 + $0x4] sm:$0xf] }
 0x21b   : > { %630 = vst [vmem:[#allocation2 + $0x8] sm:$0xff] %v626_v16 }
 0x21c   : > { %v577_v17 = vpop.f32.mrf.mxu0  ;;  %v596_v18 = vpop.f32.mrf.mxu1 }
 0x21d   : > { %v1031_v20 = vclamps-f32 %v577_v17, 1.0  ;;  %v1032_v21 = vclamps-f32 %v596_v18, 1.0 }
 0x21f   : > { %v621_v22 = vsub.f32 %v577_v17, %v1031_v20  ;;  %v622_v23 = vsub.f32 %v596_v18, %v1032_v21 }
 0x221   : > { %v627_v24 = vpack.c.bf16 %v622_v23, %v621_v22 }
 0x222   : > { %v1113_v39 = vld [vmem:[#allocation2 + $0x4] sm:$0xf0]  ;;  %v1039_v40 = vld [vmem:[#allocation2 + $0x8] sm:$0xf0] }
 0x223   : > { %631 = vst [vmem:[#allocation2 + $0x10] sm:$0xff] %v627_v24  ;;  %v1038_v43 = vor.u32 %v1113_v39, %v1037_v41  ;;  %v1042_v44 = vor.u32 %v1112_v42, %v1039_v40 }
 0x224   : > { %v579_v25 = vpop.f32.mrf.mxu0  ;;  %v598_v27 = vpop.f32.mrf.mxu1 }
 0x225   : > { %v1033_v28 = vclamps-f32 %v579_v25, 1.0  ;;  %v1034_v29 = vclamps-f32 %v598_v27, 1.0 }
 0x227   : > { %v623_v30 = vsub.f32 %v579_v25, %v1033_v28  ;;  %v624_v31 = vsub.f32 %v598_v27, %v1034_v29 }
 0x229   : > { %v628_v32 = vpack.c.bf16 %v624_v31, %v623_v30 }
 0x22a   : > { %v1045_v33 = vld [vmem:[#allocation2 + $0x10] sm:$0xf]  ;;  %v1114_v35 = vld [vmem:[#allocation2 + $0x14] sm:$0xf] }
 0x22b   : > { %632 = vst [vmem:[#allocation2 + $0x18] sm:$0xff] %v628_v32 }
 0x232   : > { %v1115_v34 = vld [vmem:[#allocation2 + $0x14] sm:$0xf0]  ;;  %v1047_v36 = vld [vmem:[#allocation2 + $0x18] sm:$0xf0] }
 0x233   : > { %v1046_v37 = vor.u32 %v1115_v34, %v1045_v33  ;;  %v1050_v38 = vor.u32 %v1114_v35, %v1047_v36 }
 0x235   : > { %687 = vmatpush.bf16.msrb.mxu2 %v1046_v37  ;;  %706 = vmatpush.bf16.msrb.mxu3 %v1050_v38 }
 0x239   : > { %688 = vmatpush.bf16.msrb.mxu2 %v1038_v43  ;;  %707 = vmatpush.bf16.msrb.mxu3 %v1042_v44 }
 0x23c   : > { %1067 = vmatmul.msk.bf16.vlgmr.msrb.gmra.mxu2 %vm438_vm2, %v1474_v19  ;;  %1069 = vmatmul.msk.bf16.vlgmr.msrb.gmra.mxu3 %vm438_vm2, %v1474_v19 }
 0x24c   : > { %1068 = vmatmul.msk.bf16.gmra.mxu2 %vm438_vm2, %v1480_v26  ;;  %1070 = vmatmul.msk.bf16.gmra.mxu3 %vm438_vm2, %v1480_v26 }
 0x2bf   : > { %v690_v45 = vpop.f32.mrf.mxu2  ;;  %v709_v46 = vpop.f32.mrf.mxu3 }
 0x2c0   : > { %v1071_v58 = vclamps-f32 %v690_v45, 1.0  ;;  %v1072_v59 = vclamps-f32 %v709_v46, 1.0 }
 0x2c2   : > { %v735_v3 = vsub.f32 %v690_v45, %v1071_v58  ;;  %v736_v4 = vsub.f32 %v709_v46, %v1072_v59 }
 0x2c7   : > { %v692_v47 = vpop.f32.mrf.mxu2  ;;  %v711_v48 = vpop.f32.mrf.mxu3 }
 0x2c8   : > { %v1073_v55 = vclamps-f32 %v692_v47, 1.0  ;;  %v1074_v56 = vclamps-f32 %v711_v48, 1.0 }
 0x2ca   : > { %v737_v63 = vsub.f32 %v692_v47, %v1073_v55  ;;  %v738_v0 = vsub.f32 %v711_v48, %v1074_v56 }
 0x2cc   : > { %v743_v5 = vpack.c.bf16 %v737_v63, %v735_v3  ;;  %v744_v6 = vpack.c.bf16 %v738_v0, %v736_v4 }
 0x2cf   : > { %v695_v49 = vpop.f32.mrf.mxu2  ;;  %v714_v50 = vpop.f32.mrf.mxu3 }
 0x2d0   : > { %v1075_v51 = vclamps-f32 %v695_v49, 1.0  ;;  %v1076_v52 = vclamps-f32 %v714_v50, 1.0 }
 0x2d2   : > { %v739_v60 = vsub.f32 %v695_v49, %v1075_v51  ;;  %v740_v61 = vsub.f32 %v714_v50, %v1076_v52 }
 0x2d7   : > { %v697_v53 = vpop.f32.mrf.mxu2  ;;  %v716_v54 = vpop.f32.mrf.mxu3 }
 0x2d8   : > { %v1077_v57 = vclamps-f32 %v697_v53, 1.0  ;;  %v1078_v19 = vclamps-f32 %v716_v54, 1.0 }
 0x2da   : > { %v741_v62 = vsub.f32 %v697_v53, %v1077_v57  ;;  %v742_v26 = vsub.f32 %v716_v54, %v1078_v19 }
 0x2dc   : > { %v745_v1 = vpack.c.bf16 %v741_v62, %v739_v60  ;;  %v746_v2 = vpack.c.bf16 %v742_v26, %v740_v61 }
 0x2de   : > { %762 = vmatpush.bf16.msra.mxu0 %v745_v1  ;;  %776 = vmatpush.bf16.msra.mxu1 %v746_v2 }
 0x2e2   : > { %763 = vmatpush.bf16.msra.mxu0 %v743_v5  ;;  %777 = vmatpush.bf16.msra.mxu1 %v744_v6 }
 0x2e5   : > { %1083 = vmatmul.msk.bf16.vlgmr.msra.gmra.mxu0 %vm752_vm3, %v1095_v7  ;;  %1084 = vmatmul.msk.bf16.vlgmr.msra.gmra.mxu1 %vm752_vm3, %v1095_v7 }
 0x362   : > { %v765_v8 = vpop.f32.mrf.mxu0  ;;  %v779_v9 = vpop.f32.mrf.mxu1 }
 0x363   : > { %v784_v10 = vpack.c.bf16 %v779_v9, %v765_v8 }
 0x365   : > { %786 = vst [vmem:[%s249_s13] sm:$0xff] %v784_v10 }
 0x36a   : > { %v767_v11 = vpop.f32.mrf.mxu0  ;;  %v781_v12 = vpop.f32.mrf.mxu1 }
 0x36b   : > { %v785_v13 = vpack.c.bf16 %v781_v12, %v767_v11 }
 0x36d   : > { %787 = vst [vmem:[%s249_s13 + $0x8] sm:$0xff] %v785_v13 }
 0x36e   : > { %1288 = shalt.err (!%p1285_p9)
}
 0x36f   : > { %s1353_s10 = smov 128   ;;  %s1354_s11 = smov 8  }
 0x370   : > { %1129 = dma.vmem_to_hbm [thread:$0]  (%p1420_p4), %s804_s24, 256, %s806_s26, %s789_s5, %s1353_s10, %s1353_s10, %s1354_s11  }
 0x371 PF: > { %p1146_p10 = scmp.ge.s32.totalorder %s1347_s20, 2  ;;  %s820_s12 = sand.u32 1, %s1327_s15  }
 0x372   : > { %s821_s13 = scalar_lea.sflag [#allocation5], %s820_s12 }
 0x373   : > { %p1139_p11 = pnand %p1146_p10, %p1427_p8 }
 0x375   : > { %p1140_p12 = pneg %p1139_p11 }
 0x377   : > { %1322 = dma.done.wait (%p1140_p12), %s821_s13, 256  }
 0x378   : > { %1324 = vsyncadd (%p1140_p12), %s821_s13, 4294967040  ;;  %s19_s20 = sadd.s32 1, %s1347_s20   ;;  %s1548_s15 = smov %s1331_s16 }
 0x379   : > { %p16_p13 = scmp.ge.s32.totalorder %s19_s20, 4   ;;  %s1549_s16 = smov %s1335_s17 }
 0x37a   : > { %s1550_s17 = smov %s1433_s28  ;;  %s1551_s18 = smov %s1343_s19 }
 0x37b   : > { %s1552_s19 = smov %s1554_s23  ;;  %18 = sbr.rel (!%p16_p13) target bundleno = 6 (0x6), region = 80 }
 0x380   :  { %827 = vsyncpa [#allocation4], 1 }
 0x381   :  { %829 = vsyncpa [#allocation4 + $0x1], 1 }
 0x382   :  { %830 = vsyncpa [#allocation7], 1 }
 0x383   :  { %831 = vsyncpa [#allocation5], 1 }
 0x384   :  { %833 = vsyncpa [#allocation5 + $0x1], 1 }

</bundles_post_ra>
